<compile_context>
chip_gen: v5e
topology: v5e:2x2
jax: 0.10.0
libtpu: 0.0.40
codegen_flags: <defaults>
</compile_context>

<pallas_src>
import functools

import jax
import jax.numpy as jnp
from jax.experimental import pallas as pl
from jax.experimental.pallas import tpu as pltpu


# ----------------------------------------------------------------------------
# In-kernel helpers (operate on values already resident in VMEM / vregs).
# ----------------------------------------------------------------------------
def _layernorm_rows(x2, g_row, b_row, eps):
    """LayerNorm over the last (lane) dim of an (R, L) tile. gamma/beta: (1, L)."""
    n = x2.shape[-1]
    inv_n = 1.0 / n
    s1 = jnp.sum(x2, axis=-1, keepdims=True)           # one pass: sum
    s2 = jnp.sum(x2 * x2, axis=-1, keepdims=True)      #           sum of squares
    mean = s1 * inv_n
    var = jnp.maximum(s2 * inv_n - mean * mean, 0.0)    # biased variance (PyTorch LN)
    return (x2 - mean) * jax.lax.rsqrt(var + eps) * g_row + b_row


def _conv_rows_store(u, w_cat, cb_col, o_ref, *, C, TB, mxu_dtype):
    """Conv1d(kernel=3, stride=1, pad=1) along the lane dim, per local batch row.

    u      : (TB*C, L) residual sum (f32); rows ordered batch-major / channel-minor.
    w_cat  : (OC, 3*C) == conv_w.transpose(0, 2, 1).reshape(OC, 3*C)
    cb_col : (OC, 1)
    Writes the (TB*OC, L) result into o_ref.
    """
    L = u.shape[-1]
    OC = w_cat.shape[0]
    lane = jax.lax.broadcasted_iota(jnp.int32, u.shape, dimension=1)
    # u_m1[:, l] = u[:, l-1] (0 at l == 0); u_p1[:, l] = u[:, l+1] (0 at l == L-1).
    # pltpu.roll runs on the XLU; the border mask is a cheap VPU select.
    u_m1 = jnp.where(lane == 0, 0.0, pltpu.roll(u, 1, axis=1))
    u_p1 = jnp.where(lane == L - 1, 0.0, pltpu.roll(u, L - 1, axis=1))
    w = w_cat if mxu_dtype is None else w_cat.astype(mxu_dtype)
    for lb in range(TB):                                  # static unroll (TB small)
        r0 = lb * C
        patches = jnp.concatenate(
            [u_m1[r0:r0 + C], u[r0:r0 + C], u_p1[r0:r0 + C]], axis=0)   # (3C, L)
        if mxu_dtype is not None:
            patches = patches.astype(mxu_dtype)
        acc = jnp.dot(w, patches, preferred_element_type=jnp.float32)    # (OC, L)
        o_ref[lb * OC:(lb + 1) * OC, :] = (acc + cb_col).astype(o_ref.dtype)


# ----------------------------------------------------------------------------
# Kernels.
# ----------------------------------------------------------------------------
def _fused_kernel(x_ref, g_ref, b_ref, w_ref, cb_ref, o_ref, *, eps, C, TB,
                  fn, mxu_dtype):
    # Fully fused path: norm -> fn -> +x -> conv, one HBM pass per block.
    xb = x_ref[...].astype(jnp.float32)                   # (TB*C, L)
    y = _layernorm_rows(xb, g_ref[...], b_ref[...], eps)
    if fn is not None:
        # `fn` must be elementwise / shape-agnostic to be traced in-kernel
        # (it sees a (TB*C, L) tile, not the module's (B, C, L)).
        y = fn(y)
    _conv_rows_store(y + xb, w_ref[...], cb_ref[...], o_ref,
                     C=C, TB=TB, mxu_dtype=mxu_dtype)


def _layernorm_kernel(x_ref, g_ref, b_ref, y_ref, *, eps):
    y_ref[...] = _layernorm_rows(x_ref[...].astype(jnp.float32),
                                 g_ref[...], b_ref[...], eps).astype(y_ref.dtype)


def _add_conv_kernel(h_ref, x_ref, w_ref, cb_ref, o_ref, *, C, TB, mxu_dtype):
    u = h_ref[...].astype(jnp.float32) + x_ref[...].astype(jnp.float32)
    _conv_rows_store(u, w_ref[...], cb_ref[...], o_ref, C=C, TB=TB,
                     mxu_dtype=mxu_dtype)


# ----------------------------------------------------------------------------
# Wrapper.
# ----------------------------------------------------------------------------
def _pick_tb(B, C, L, *, max_tile_bytes=1 << 20, max_unroll=16):
    """Batch rows per block: big enough to amortize per-step overhead and make
    MiB-scale DMAs, small enough to stay well under the v7x 32 MiB scoped-VMEM
    default and to keep >= 2 grid steps for v7x megacore sharding."""
    row_bytes = C * L * 4
    cap = max(1, min(max_unroll, max_tile_bytes // max(row_bytes, 1)))
    if B >= 2:
        cap = max(1, min(cap, B // 2))     # keep >= 2 grid steps (v7x: 2 TCs)
    cap = min(cap, B)
    for tb in range(cap, max(cap // 2, 1) - 1, -1):   # prefer an exact divisor
        if B % tb == 0:
            return tb
    return cap                              # partial last block handled by Pallas


def pre_norm_residual_pallas(x, ln_weight, ln_bias, conv_weight, conv_bias,
                             fn=None, *, eps=1e-5, fuse_fn=True, mxu_dtype=None):
    """PreNormResidual forward: Conv1d(fn(LayerNorm(x)) + x).

    x:           (B, C, L) float32, NCL like PyTorch (C == 64, L == LayerNorm dim)
    ln_weight:   (L,)    ln_bias: (L,)
    conv_weight: (OC, C, 3)  conv_bias: (OC,)
    fn:          None = identity (fully fused).  If callable and fuse_fn=True it is
                 traced inside the fused kernel (elementwise fns only); with
                 fuse_fn=False it is applied as plain JAX between two kernels.
    mxu_dtype:   optional dtype (e.g. jnp.bfloat16) for the conv matmul inputs;
                 recommended on v5e, accumulation stays f32.
    """
    B, C, L = x.shape
    OC, IC, K = conv_weight.shape
    assert IC == C and K == 3, "Conv1d weight must be (OC, C, 3) to match the module"
    assert ln_weight.shape == (L,) and ln_bias.shape == (L,)
    # L should be a multiple of 128 for unmasked lane-dense stores; still correct
    # otherwise (block extent == full array extent), just slower.
    # TODO(synk): wrapper-side lane padding for L % 128 != 0 would need masked LN stats.

    g_row = ln_weight.reshape(1, L).astype(jnp.float32)
    b_row = ln_bias.reshape(1, L).astype(jnp.float32)
    # w_cat[:, k*C + c] == conv_weight[:, c, k]  (matches patch row ordering)
    w_cat = conv_weight.transpose(0, 2, 1).reshape(OC, 3 * C).astype(jnp.float32)
    cb_col = conv_bias.reshape(OC, 1).astype(jnp.float32)

    TB = _pick_tb(B, C, L)
    nblk = pl.cdiv(B, TB)

    x2 = x.reshape(B * C, L)                  # free contiguous reshape, lane-dense

    x_spec = pl.BlockSpec((TB * C, L), lambda i: (i, 0))
    o_spec = pl.BlockSpec((TB * OC, L), lambda i: (i, 0))
    vec_spec = pl.BlockSpec((1, L), lambda i: (0, 0))        # gamma / beta, resident
    w_spec = pl.BlockSpec((OC, 3 * C), lambda i: (0, 0))     # conv weight, resident
    cb_spec = pl.BlockSpec((OC, 1), lambda i: (0, 0))        # conv bias, resident
    cparams = pltpu.CompilerParams(dimension_semantics=("parallel",))

    if fn is None or fuse_fn:
        # Single fused kernel: norm + fn + residual + conv in one HBM pass.
        out2 = pl.pallas_call(
            functools.partial(_fused_kernel, eps=eps, C=C, TB=TB, fn=fn,
                              mxu_dtype=mxu_dtype),
            out_shape=jax.ShapeDtypeStruct((B * OC, L), x.dtype),
            grid_spec=pltpu.PrefetchScalarGridSpec(
                num_scalar_prefetch=0, grid=(nblk,),
                in_specs=[x_spec, vec_spec, vec_spec, w_spec, cb_spec],
                out_specs=o_spec),
            compiler_params=cparams,
        )(x2, g_row, b_row, w_cat, cb_col)
        return out2.reshape(B, OC, L)

    # General path (arbitrary fn): LayerNorm kernel -> fn (plain JAX on (B, C, L))
    # -> fused residual-add + conv kernel.
    # TODO(synk): this path pays one extra HBM write/read for fn's input/output.
    y2 = pl.pallas_call(
        functools.partial(_layernorm_kernel, eps=eps),
        out_shape=jax.ShapeDtypeStruct((B * C, L), x.dtype),
        grid_spec=pltpu.PrefetchScalarGridSpec(
            num_scalar_prefetch=0, grid=(nblk,),
            in_specs=[x_spec, vec_spec, vec_spec],
            out_specs=x_spec),
        compiler_params=cparams,
    )(x2, g_row, b_row)

    h2 = fn(y2.reshape(B, C, L)).reshape(B * C, L)

    out2 = pl.pallas_call(
        functools.partial(_add_conv_kernel, C=C, TB=TB, mxu_dtype=mxu_dtype),
        out_shape=jax.ShapeDtypeStruct((B * OC, L), x.dtype),
        grid_spec=pltpu.PrefetchScalarGridSpec(
            num_scalar_prefetch=0, grid=(nblk,),
            in_specs=[x_spec, x_spec, w_spec, cb_spec],
            out_specs=o_spec),
        compiler_params=cparams,
    )(h2, x2, w_cat, cb_col)
    return out2.reshape(B, OC, L)


# ----------------------------------------------------------------------------
# Pure-JAX reference matching PyTorch semantics.
# ----------------------------------------------------------------------------
def pre_norm_residual_reference(x, ln_weight, ln_bias, conv_weight, conv_bias,
                                fn=None, *, eps=1e-5):
    mean = x.mean(axis=-1, keepdims=True)
    var = ((x - mean) ** 2).mean(axis=-1, keepdims=True)
    y = (x - mean) * jax.lax.rsqrt(var + eps) * ln_weight + ln_bias
    if fn is not None:
        y = fn(y)
    u = y + x
    out = jax.lax.conv_general_dilated(
        u, conv_weight, window_strides=(1,), padding=((1, 1),),
        dimension_numbers=("NCH", "OIH", "NCH"))
    return out + conv_bias.reshape(1, -1, 1)


if __name__ == "__main__":
    key = jax.random.PRNGKey(0)
    kx, kg, kb, kw, kc = jax.random.split(key, 5)

    # Conv1d(64, 64, ...) in the module fixes C = 64; LayerNorm dim = L.
    B, C, L = 2, 64, 128

    x = jax.random.normal(kx, (B, C, L), dtype=jnp.float32)
    ln_weight = 1.0 + 0.1 * jax.random.normal(kg, (L,), dtype=jnp.float32)
    ln_bias = 0.1 * jax.random.normal(kb, (L,), dtype=jnp.float32)

    fan_in = C * 3
    bound = 1.0 / (fan_in ** 0.5)
    conv_weight = jax.random.uniform(kw, (C, C, 3), minval=-bound, maxval=bound,
                                     dtype=jnp.float32)
    conv_bias = jax.random.uniform(kc, (C,), minval=-bound, maxval=bound,
                                   dtype=jnp.float32)

    # 1) Fully fused path, fn = identity.
    out_id = jax.block_until_ready(
        pre_norm_residual_pallas(x, ln_weight, ln_bias, conv_weight, conv_bias,
                                 fn=None))
    ref_id = pre_norm_residual_reference(x, ln_weight, ln_bias, conv_weight,
                                         conv_bias)

    # 2) Fully fused path with an elementwise fn traced inside the kernel.
    out_tanh = jax.block_until_ready(
        pre_norm_residual_pallas(x, ln_weight, ln_bias, conv_weight, conv_bias,
                                 fn=jnp.tanh, fuse_fn=True))
    ref_tanh = pre_norm_residual_reference(x, ln_weight, ln_bias, conv_weight,
                                           conv_bias, fn=jnp.tanh)

    # 3) General (unfused) path for arbitrary fn — exercises both kernels.
    out_gen = jax.block_until_ready(
        pre_norm_residual_pallas(x, ln_weight, ln_bias, conv_weight, conv_bias,
                                 fn=lambda z: z, fuse_fn=False))

    assert out_id.shape == (B, C, L)
    assert jnp.allclose(out_id, ref_id, atol=2e-4, rtol=2e-4), "fused identity mismatch"
    assert jnp.allclose(out_tanh, ref_tanh, atol=2e-4, rtol=2e-4), "fused fn mismatch"
    assert jnp.allclose(out_gen, ref_id, atol=2e-4, rtol=2e-4), "general path mismatch"

    print("KERNEL_OK")
</pallas_src>

<mosaic_0001>
module attributes {stable_mosaic.version = 11 : i64} {
  func.func @_fused_kernel(%arg0: i32, %arg1: memref<64x128xf32, #tpu.memory_space<vmem>>, %arg2: memref<1x128xf32, #tpu.memory_space<vmem>>, %arg3: memref<1x128xf32, #tpu.memory_space<vmem>>, %arg4: memref<64x192xf32, #tpu.memory_space<vmem>>, %arg5: memref<64x1xf32, #tpu.memory_space<vmem>>, %arg6: memref<64x128xf32, #tpu.memory_space<vmem>>) attributes {dimension_semantics = [#tpu.dimension_semantics<parallel>], iteration_bounds = array<i64: 2>, scalar_prefetch = 0 : i64, scratch_operands = 0 : i64, tpu.core_type = #tpu.core_type<tc>, window_params = [{transform_indices = @transform_0, window_bounds = array<i64: 64, 128>}, {pipeline_mode = #tpu.pipeline_mode<synchronous>, transform_indices = @transform_1, window_bounds = array<i64: 1, 128>}, {pipeline_mode = #tpu.pipeline_mode<synchronous>, transform_indices = @transform_2, window_bounds = array<i64: 1, 128>}, {pipeline_mode = #tpu.pipeline_mode<synchronous>, transform_indices = @transform_3, window_bounds = array<i64: 64, 192>}, {pipeline_mode = #tpu.pipeline_mode<synchronous>, transform_indices = @transform_4, window_bounds = array<i64: 64, 1>}, {transform_indices = @transform_5, window_bounds = array<i64: 64, 128>}]} {
    %c0 = arith.constant 0 : index
    %c0_0 = arith.constant 0 : index
    %0 = vector.load %arg1[%c0, %c0_0] : memref<64x128xf32, #tpu.memory_space<vmem>>, vector<64x128xf32>
    %c0_1 = arith.constant 0 : index
    %c0_2 = arith.constant 0 : index
    %1 = vector.load %arg2[%c0_1, %c0_2] : memref<1x128xf32, #tpu.memory_space<vmem>>, vector<1x128xf32>
    %c0_3 = arith.constant 0 : index
    %c0_4 = arith.constant 0 : index
    %2 = vector.load %arg3[%c0_3, %c0_4] : memref<1x128xf32, #tpu.memory_space<vmem>>, vector<1x128xf32>
    %cst = arith.constant dense<0.000000e+00> : vector<64xf32>
    %3 = vector.multi_reduction <add>, %0, %cst [1] : vector<64x128xf32> to vector<64xf32>
    %4 = vector.shape_cast %3 : vector<64xf32> to vector<64x1xf32>
    %5 = arith.mulf %0, %0 : vector<64x128xf32>
    %cst_5 = arith.constant dense<0.000000e+00> : vector<64xf32>
    %6 = vector.multi_reduction <add>, %5, %cst_5 [1] : vector<64x128xf32> to vector<64xf32>
    %7 = vector.shape_cast %6 : vector<64xf32> to vector<64x1xf32>
    %cst_6 = arith.constant 7.812500e-03 : f32
    %8 = vector.broadcast %cst_6 : f32 to vector<64x1xf32>
    %9 = arith.mulf %4, %8 : vector<64x1xf32>
    %cst_7 = arith.constant 7.812500e-03 : f32
    %10 = vector.broadcast %cst_7 : f32 to vector<64x1xf32>
    %11 = arith.mulf %7, %10 : vector<64x1xf32>
    %12 = arith.mulf %9, %9 : vector<64x1xf32>
    %13 = arith.subf %11, %12 : vector<64x1xf32>
    %cst_8 = arith.constant 0.000000e+00 : f32
    %14 = vector.broadcast %cst_8 : f32 to vector<64x1xf32>
    %15 = arith.maximumf %13, %14 : vector<64x1xf32>
    %16 = vector.broadcast %9 : vector<64x1xf32> to vector<64x128xf32>
    %17 = arith.subf %0, %16 : vector<64x128xf32>
    %cst_9 = arith.constant 9.99999974E-6 : f32
    %18 = vector.broadcast %cst_9 : f32 to vector<64x1xf32>
    %19 = arith.addf %15, %18 : vector<64x1xf32>
    %20 = math.rsqrt %19 : vector<64x1xf32>
    %21 = vector.broadcast %20 : vector<64x1xf32> to vector<64x128xf32>
    %22 = arith.mulf %17, %21 : vector<64x128xf32>
    %23 = vector.broadcast %1 : vector<1x128xf32> to vector<64x128xf32>
    %24 = arith.mulf %22, %23 : vector<64x128xf32>
    %25 = vector.broadcast %2 : vector<1x128xf32> to vector<64x128xf32>
    %26 = arith.addf %24, %25 : vector<64x128xf32>
    %27 = arith.addf %26, %0 : vector<64x128xf32>
    %c0_10 = arith.constant 0 : index
    %c0_11 = arith.constant 0 : index
    %28 = vector.load %arg4[%c0_10, %c0_11] : memref<64x192xf32, #tpu.memory_space<vmem>>, vector<64x192xf32>
    %c0_12 = arith.constant 0 : index
    %c0_13 = arith.constant 0 : index
    %29 = vector.load %arg5[%c0_12, %c0_13] : memref<64x1xf32, #tpu.memory_space<vmem>>, vector<64x1xf32>
    %30 = tpu.iota {dimensions = array<i32: 1>} : vector<64x128xi32>
    %c0_i32 = arith.constant 0 : i32
    %31 = vector.broadcast %c0_i32 : i32 to vector<64x128xi32>
    %32 = arith.cmpi eq, %30, %31 : vector<64x128xi32>
    %c1_i32 = arith.constant 1 : i32
    %33 = tpu.dynamic_rotate %27 by %c1_i32 dim 1 : vector<64x128xf32>, i32 -> vector<64x128xf32>
    %cst_14 = arith.constant 0.000000e+00 : f32
    %34 = vector.broadcast %cst_14 : f32 to vector<64x128xf32>
    %35 = arith.select %32, %34, %33 : vector<64x128xi1>, vector<64x128xf32>
    %c127_i32 = arith.constant 127 : i32
    %36 = vector.broadcast %c127_i32 : i32 to vector<64x128xi32>
    %37 = arith.cmpi eq, %30, %36 : vector<64x128xi32>
    %c127_i32_15 = arith.constant 127 : i32
    %38 = tpu.dynamic_rotate %27 by %c127_i32_15 dim 1 : vector<64x128xf32>, i32 -> vector<64x128xf32>
    %cst_16 = arith.constant 0.000000e+00 : f32
    %39 = vector.broadcast %cst_16 : f32 to vector<64x128xf32>
    %40 = arith.select %37, %39, %38 : vector<64x128xi1>, vector<64x128xf32>
    %41 = tpu.concatenate %35, %27, %40 in 0 : vector<64x128xf32>, vector<64x128xf32>, vector<64x128xf32> -> vector<192x128xf32>
    %cst_17 = arith.constant dense<0.000000e+00> : vector<64x128xf32>
    %42 = tpu.matmul %28, %41, %cst_17 {dimension_numbers = #tpu.dot_dimension_numbers<[1], [0], [0], [1], [0, 0, 1, 1], [], []>} : vector<64x192xf32>, vector<192x128xf32>, vector<64x128xf32> -> vector<64x128xf32>
    %43 = vector.broadcast %29 : vector<64x1xf32> to vector<64x128xf32>
    %44 = arith.addf %42, %43 : vector<64x128xf32>
    %c0_18 = arith.constant 0 : index
    %c0_19 = arith.constant 0 : index
    %45 = vector.load %arg6[%c0_18, %c0_19] : memref<64x128xf32, #tpu.memory_space<vmem>>, vector<64x128xf32>
    tpu.vector_store %arg6[%c0_18, %c0_19], %44 {strides = array<i32>} : memref<64x128xf32, #tpu.memory_space<vmem>>, vector<64x128xf32>,
    return
  }
  func.func @transform_0(%arg0: i32) -> (i32, i32) {
    %c0_i32 = arith.constant 0 : i32
    %c0_i32_0 = arith.constant 0 : i32
    return %arg0, %c0_i32 : i32, i32
  }
  func.func @transform_1(%arg0: i32) -> (i32, i32) {
    %c0_i32 = arith.constant 0 : i32
    %c0_i32_0 = arith.constant 0 : i32
    %c0_i32_1 = arith.constant 0 : i32
    return %c0_i32, %c0_i32_0 : i32, i32
  }
  func.func @transform_2(%arg0: i32) -> (i32, i32) {
    %c0_i32 = arith.constant 0 : i32
    %c0_i32_0 = arith.constant 0 : i32
    %c0_i32_1 = arith.constant 0 : i32
    return %c0_i32, %c0_i32_0 : i32, i32
  }
  func.func @transform_3(%arg0: i32) -> (i32, i32) {
    %c0_i32 = arith.constant 0 : i32
    %c0_i32_0 = arith.constant 0 : i32
    %c0_i32_1 = arith.constant 0 : i32
    return %c0_i32, %c0_i32_0 : i32, i32
  }
  func.func @transform_4(%arg0: i32) -> (i32, i32) {
    %c0_i32 = arith.constant 0 : i32
    %c0_i32_0 = arith.constant 0 : i32
    %c0_i32_1 = arith.constant 0 : i32
    return %c0_i32, %c0_i32_0 : i32, i32
  }
  func.func @transform_5(%arg0: i32) -> (i32, i32) {
    %c0_i32 = arith.constant 0 : i32
    %c0_i32_0 = arith.constant 0 : i32
    return %arg0, %c0_i32 : i32, i32
  }
}

</mosaic_0001>

<bundles_post_ra>
// kernel: tpu_custom_call.1
= control target key start
LH: loop header
LB: loop body
LE: loop exit
PB: predicated region body
PF: predicated region fallthrough
CT: control target
= control target key end

     0   :  { %10 = vsyncpa [#allocation3], 0  ;;  %s1624_s0 = inlined_call_operand.hbm [shape: f32[128,128], index: 0, kind: input, shape index: {}]   ;;  %s1625_s1 = inlined_call_operand.vmem [shape: f32[1,128], index: 1, kind: input, shape index: {}]   ;;  %s1626_s2 = inlined_call_operand.vmem [shape: f32[1,128], index: 2, kind: input, shape index: {}]   ;;  %s1627_s3 = inlined_call_operand.hbm [shape: f32[64,192], index: 3, kind: input, shape index: {}]   ;;  %s1628_s4 = inlined_call_operand.vmem [shape: f32[64,1], index: 4, kind: input, shape index: {}]   ;;  %s1629_s5 = inlined_call_operand.hbm [shape: f32[128,128], index: 5, kind: output, shape index: {}]  }
   0x1   :  { %12 = vsyncpa [#allocation3 + $0x1], 0 }
   0x2   :  { %13 = vsyncpa [#allocation6], 0 }
   0x3   :  { %14 = vsyncpa [#allocation4], 0 }
   0x4   :  { %16 = vsyncpa [#allocation4 + $0x1], 0  ;;  %s1161_s18 = smov 0   ;;  %s1163_s19 = smov 0  }
   0x5   :  { %s1165_s20 = smov 0   ;;  %s1167_s21 = smov 0  }
   0x6 LB: > { %s1182_s22 = sadd.s32 4294967295, %s1119_s21   ;;  %s818_s23 = sadd.s32 4294967294, %s1119_s21   ;;  %s1119_s21 = sphi %s1167_s21, %s1639_s21   ;;  %s1115_s20 = sphi %s1165_s20, %s1638_s20   ;;  %s1111_s19 = sphi %s1163_s19, %s1637_s19   ;;  %s1107_s18 = sphi %s1161_s18, %s1636_s18  }
   0x7   : > { %p42_p0 = scmp.ne.s32.totalorder %s1111_s19, %s1107_s18  ;;  %p43_p1 = scmp.eq.s32.totalorder %s1182_s22, 0 }
   0x8   : > { %p150_p2 = scmp.eq.s32.totalorder %s1182_s22, 1  ;;  %p156_p3 = scmp.eq.s32.totalorder %s818_s23, 1 }
   0x9   : > { %p1191_p4 = por %p43_p1, %p42_p0  ;;  %p819_p5 = scmp.ge.s32.totalorder %s1119_s21, 1 }
   0xa   : > { %p1196_p6 = por %p156_p3, %p42_p0  ;;  %p163_p7 = scmp.lt.s32.totalorder %s1119_s21, 3 }
   0xb   : > { %s180_s28 = sshll.u32 %s1627_s3, 4  ;;  %s1121_s30 = smov [#allocation5]   ;;  %s181_s28 = int_to_ptr.hbm [resolvable:$true] %s180_s28 }
   0xc   : > { %p1204_p8 = pnand %p819_p5, %p163_p7  ;;  %s182_s6 = sshll.u32 %s1121_s30, 4  ;;  %s183_s6 = int_to_ptr.vmem [resolvable:$true] %s182_s6 }
   0xd   : > { %s1214_s7 = sadd.s32 1, %s1119_s21   ;;  %s1122_s8 = smov 256  }
   0xe   : > { %p910_p9 = pneg %p1204_p8  ;;  %s1123_s9 = smov 16  }
   0xf   : > { %s26_s10 = ssub.s32 %s1119_s21, %s1214_s7  ;;  %s29_s11 = sadd.s32 1, %s1115_s20 }
  0x10   : > { %p911_p10 = pnand %p910_p9, %p43_p1  ;;  %p27_p12 = scmp.eq.s32.totalorder %s26_s10, 0 }
  0x11   : > { %p36_p13 = scmp.ne.s32.totalorder %s1115_s20, %s1111_s19  ;;  %p37_p0 = scmp.eq.s32.totalorder %s1119_s21, 0 }
  0x12   : > { %913 = dma.hbm_to_vmem [thread:$0]  (!%p911_p10), %s181_s28, 2048, %s183_s6, [#allocation6], %s1122_s8, %s1122_s8, %s1123_s9  }
  0x13   : > { %p923_p3 = scmp.lt.s32.totalorder %s1119_s21, 2  ;;  %p38_p5 = por %p37_p0, %p36_p13 }
  0x14   : > { %s1224_s12 = scalar_select %p27_p12, %s1115_s20, %s29_s11  }
  0x15   : > { %p1228_p7 = por %p150_p2, %p36_p13  ;;  %s199_s14 = sand.u32 1, %s1115_s20  }
  0x16   : > { %s874_s15 = sshll.u32 %s1119_s21, 6  ;;  %s822_s16 = sshll.u32 %s199_s14, 6 }
  0x17   : > { %s208_s26 = scalar_lea.hbm %s1624_s0, %s874_s15  ;;  %s203_s28 = scalar_lea.vmem [#allocation2], %s822_s16 }
  0x18   : > { %s209_s27 = sshll.u32 %s208_s26, 4  ;;  %s211_s30 = sshll.u32 %s203_s28, 4  ;;  %s210_s27 = int_to_ptr.hbm [resolvable:$true] %s209_s27  ;;  %s212_s30 = int_to_ptr.vmem [resolvable:$true] %s211_s30 }
  0x19   : > { %p1239_p9 = pnand %p923_p3, %p38_p5  ;;  %s200_s8 = scalar_lea.sflag [#allocation3], %s199_s14 }
  0x1a   : > { %s1019_s9 = sshra.s32 %s210_s27, 4  ;;  %s1026_s16 = scalar_lea.hbm %s1624_s0, 128  ;;  %s1020_s9 = int_to_ptr.hbm [resolvable:$true] %s1019_s9 }
  0x1b   : > { %s1021_s10 = scalar_lea.hbm %s1020_s9, 64  ;;  %p1023_p10 = pneg %p1239_p9 }
  0x1c   : > { %p1022_p2 = scmp.ne.s32.totalorder %s1020_s9, %s1021_s10  ;;  %p1027_p0 = scmp.lt.s32.totalorder %s1020_s9, %s1624_s0 }
  0x1d   : > { %p1028_p3 = scmp.lt.s32.totalorder %s1026_s16, %s1021_s10 }
  0x1e   : > { %p1024_p12 = pnand %p1023_p10, %p1022_p2 }
  0x1f   : > { %p1029_p5 = por %p1028_p3, %p1027_p0 }
  0x20   : > { %p1025_p13 = pneg %p1024_p12 }
  0x22   : > { %p1030_p11 = pnand %p1029_p5, %p1025_p13 }
  0x24   : > { %1033 = shalt.err (!%p1030_p11)
}
  0x25   : > { %s1124_s14 = smov 128   ;;  %s1125_s26 = smov 8  }
  0x26   : > { %917 = dma.hbm_to_vmem [thread:$0]  (!%p1239_p9), %s210_s27, 1024, %s212_s30, %s200_s8, %s1124_s14, %s1124_s14, %s1125_s26  }
  0x27   : > { %223 = sbr.rel (%p1204_p8) target bundleno = 531 (0x213), region = 40  ;;  %s1256_s28 = sand.u32 (!%p1204_p8), 1, %s1111_s19  }
  0x28   : > { %s826_s9 = sshll.u32 (!%p1204_p8), %s1256_s28, 6  ;;  %s226_s10 = scalar_lea.sflag (!%p1204_p8), [#allocation3], %s1256_s28 }
  0x29   : > { %s1262_s11 = scalar_lea.vmem (!%p1204_p8), [#allocation2], %s826_s9 }
  0x2c   : > { %1094 = dma.done.wait (%p1191_p4), %s226_s10, 1024  }
  0x2d   : > { %1096 = vsyncadd (%p1191_p4), %s226_s10, 4294966272 }
  0x2e   : > { %1098 = dma.done.wait (%p43_p1), [#allocation6], 2048  }
  0x2f   : > { %1100 = vsyncadd (%p43_p1), [#allocation6], 4294965248  ;;  %v1273_v0 = vld [vmem:[%s1262_s11 + $0x38] sm:$0xff]  ;;  %v1276_v1 = vld [vmem:[%s1262_s11 + $0x28] sm:$0xff]  ;;  %s1126_s6 = smov 1   ;;  %s1127_s8 = smov 127  }
  0x30   : > { %v1279_v2 = vld [vmem:[%s1262_s11 + $0x20] sm:$0xff]  ;;  %288 = vadd.xlane.f32.xlu0 %v1273_v0  ;;  %284 = vadd.xlane.f32.xlu1 %v1276_v1  ;;  %v1285_v3 = vld [vmem:[%s1262_s11 + $0x30] sm:$0xff]  ;;  %v297_v4 = vmul.f32 %v1273_v0, %v1273_v0  ;;  %v295_v6 = vmul.f32 %v1276_v1, %v1276_v1  ;;  %v1297_v8 = vld [vmem:[%s1262_s11 + $0x18] sm:$0xff]  ;;  %s1580_s17 = scalar_lea.vmem [#allocation7], %s826_s9  ;;  %s875_s9 = sshll.u32 %s1182_s22, 6 }
  0x31   : > { %282 = vadd.xlane.f32.xlu2 %v1279_v2  ;;  %v296_v5 = vmul.f32 %v1285_v3, %v1285_v3  ;;  %v294_v7 = vmul.f32 %v1279_v2, %v1279_v2  ;;  %v293_v9 = vmul.f32 %v1297_v8, %v1297_v8  ;;  %v1303_v10 = vld [vmem:[%s1262_s11 + $0x10] sm:$0xff]  ;;  %v1306_v11 = vld [vmem:[%s1262_s11 + $0x8] sm:$0xff]  ;;  %v1315_v14 = vld [vmem:[%s1262_s11] sm:$0xff]  ;;  %s731_s26 = scalar_lea.hbm %s1629_s5, %s875_s9  ;;  %s732_s10 = sshll.u32 %s1580_s17, 4  ;;  %s733_s10 = int_to_ptr.vmem [resolvable:$true] %s732_s10 }
  0x32   : > { %v292_v12 = vmul.f32 %v1303_v10, %v1303_v10  ;;  %v291_v13 = vmul.f32 %v1306_v11, %v1306_v11  ;;  %v290_v15 = vmul.f32 %v1315_v14, %v1315_v14  ;;  %s734_s11 = sshll.u32 %s731_s26, 4  ;;  %s720_s22 = scalar_lea.sflag [#allocation4], %s1256_s28  ;;  %s735_s11 = int_to_ptr.hbm [resolvable:$true] %s734_s11 }
  0x33   : > { %s1063_s24 = sshra.s32 %s735_s11, 4  ;;  %s1064_s24 = int_to_ptr.hbm [resolvable:$true] %s1063_s24 }
  0x34   : > { %s1065_s29 = scalar_lea.hbm %s1064_s24, 64  ;;  %p1070_p11 = scmp.lt.s32.totalorder %s1064_s24, %s1629_s5 }
  0x35   : > { %p1066_p1 = scmp.ne.s32.totalorder %s1064_s24, %s1065_s29 }
  0x37   : > { %p1067_p4 = pnand %p1066_p1, %p1228_p7 }
  0x38   : > { %286 = vadd.xlane.f32.xlu0 %v1285_v3  ;;  %312 = vadd.xlane.f32.xlu1 %v297_v4 }
  0x39   : > { %310 = vadd.xlane.f32.xlu2 %v296_v5  ;;  %p1068_p8 = pneg %p1067_p4 }
  0x40   : > { %308 = vadd.xlane.f32.xlu0 %v295_v6  ;;  %280 = vadd.xlane.f32.xlu1 %v1297_v8 }
  0x41   : > { %306 = vadd.xlane.f32.xlu2 %v294_v7 }
  0x48   : > { %304 = vadd.xlane.f32.xlu1 %v293_v9  ;;  %278 = vadd.xlane.f32.xlu0 %v1303_v10 }
  0x49   : > { %276 = vadd.xlane.f32.xlu2 %v1306_v11 }
  0x50   : > { %302 = vadd.xlane.f32.xlu0 %v292_v12  ;;  %274 = vadd.xlane.f32.xlu1 %v1315_v14 }
  0x51   : > { %300 = vadd.xlane.f32.xlu2 %v291_v13 }
  0x58   : > { %298 = vadd.xlane.f32.xlu0 %v290_v15 }
  0xa3   : > { %v289_v16 = vpop.xlane.xlu0 %288  ;;  %v285_v17 = vpop.xlane.xlu1 %284 }
  0xa4   : > { %v283_v18 = vpop.xlane.xlu2 %282  ;;  %v1320_v19 = vmul.f32 0.0078125, %v289_v16  ;;  %v1328_v29 = vmul.f32 0.0078125, %v285_v17 }
  0xa5   : > { %v1330_v32 = vmul.f32 0.0078125, %v283_v18 }
  0xa6   : > { %v337_v22 = vmul.f32 %v1320_v19, %v1320_v19  ;;  %v335_v37 = vmul.f32 %v1328_v29, %v1328_v29  ;;  %v361_v63 = vsub.f32 %v1273_v0, %v1320_v19  ;;  %v359_v7 = vsub.f32 %v1276_v1, %v1328_v29 }
  0xa7   : > { %v334_v41 = vmul.f32 %v1330_v32, %v1330_v32 }
  0xab   : > { %v287_v20 = vpop.xlane.xlu0 %286  ;;  %v313_v21 = vpop.xlane.xlu1 %312 }
  0xac   : > { %v1324_v23 = vmul.f32 0.0078125, %v287_v20  ;;  %v329_v24 = vmul.f32 0.0078125, %v313_v21  ;;  %v311_v25 = vpop.xlane.xlu2 %310 }
  0xad   : > { %v328_v26 = vmul.f32 0.0078125, %v311_v25 }
  0xae   : > { %v336_v27 = vmul.f32 %v1324_v23, %v1324_v23  ;;  %v345_v28 = vsub.f32 %v329_v24, %v337_v22  ;;  %v360_v15 = vsub.f32 %v1285_v3, %v1324_v23 }
  0xb0   : > { %v353_v30 = vmax.f32 %v345_v28, 0.0  ;;  %v344_v31 = vsub.f32 %v328_v26, %v336_v27 }
  0xb2   : > { %v369_v33 = vadd.f32 1e-05, %v353_v30  ;;  %v352_v34 = vmax.f32 %v344_v31, 0.0 }
  0xb3   : > { %v309_v35 = vpop.xlane.xlu0 %308  ;;  %v281_v36 = vpop.xlane.xlu1 %280 }
  0xb4   : > { %973 = vrsqrt.f32 %v369_v33  ;;  %v368_v38 = vadd.f32 1e-05, %v352_v34  ;;  %v327_v39 = vmul.f32 0.0078125, %v309_v35  ;;  %v307_v40 = vpop.xlane.xlu2 %306  ;;  %v1336_v46 = vmul.f32 0.0078125, %v281_v36 }
  0xb5   : > { %v326_v42 = vmul.f32 0.0078125, %v307_v40  ;;  %vm446_vm1 = vweird.f32 %v369_v33 }
  0xb6   : > { %975 = vrsqrt.f32 %v368_v38  ;;  %v343_v43 = vsub.f32 %v327_v39, %v335_v37  ;;  %v333_v55 = vmul.f32 %v1336_v46, %v1336_v46  ;;  %vm436_vm2 = vweird.f32 %v368_v38 }
  0xb7   : > { %v342_v44 = vsub.f32 %v326_v42, %v334_v41 }
  0xb8   : > { %v351_v45 = vmax.f32 %v343_v43, 0.0 }
  0xb9   : > { %v350_v47 = vmax.f32 %v342_v44, 0.0 }
  0xba   : > { %v974_v48 = vpop.eup %973  ;;  %v1338_v49 = vadd.f32 1e-05, %v351_v45  ;;  %v1379_v45 = vld [vmem:[%s1626_s2] ss:$0 sm:$0xff] }
  0xbb   : > { %v441_v50 = vmul.f32 %v974_v48, %v369_v33  ;;  %v1340_v51 = vadd.f32 1e-05, %v350_v47  ;;  %v305_v52 = vpop.xlane.xlu1 %304  ;;  %v279_v53 = vpop.xlane.xlu0 %278  ;;  %vm447_vm0 = vweird.f32 %v974_v48  ;;  %v1368_v33 = vld [vmem:[%s1625_s1] ss:$0 sm:$0xff] }
  0xbc   : > { %v976_v54 = vpop.eup %975  ;;  %977 = vrsqrt.f32 %v1338_v49  ;;  %v325_v56 = vmul.f32 0.0078125, %v305_v52  ;;  %v277_v57 = vpop.xlane.xlu2 %276  ;;  %v1348_v5 = vmul.f32 0.0078125, %v279_v53  ;;  %vm448_vm4 = vmor %vm446_vm1, %vm447_vm0  ;;  %vm426_vm6 = vweird.f32 %v1338_v49 }
  0xbd   : > { %v442_v58 = vmul.f32 %v974_v48, %v441_v50  ;;  %v431_v59 = vmul.f32 %v976_v54, %v368_v38  ;;  %979 = vrsqrt.f32 %v1340_v51  ;;  %v1350_v6 = vmul.f32 0.0078125, %v277_v57 }
  0xbe   : > { %v341_v60 = vsub.f32 %v325_v56, %v333_v55  ;;  %vm437_vm3 = vweird.f32 %v976_v54  ;;  %v332_v23 = vmul.f32 %v1348_v5, %v1348_v5  ;;  %vm416_vm7 = vweird.f32 %v1340_v51 }
  0xbf   : > { %v443_v61 = vmul.f32 0.5, %v442_v58  ;;  %v432_v62 = vmul.f32 %v976_v54, %v431_v59  ;;  %v331_v25 = vmul.f32 %v1350_v6, %v1350_v6  ;;  %vm438_vm5 = vmor %vm436_vm2, %vm437_vm3 }
  0xc0   : > { %v349_v4 = vmax.f32 %v341_v60, 0.0 }
  0xc1   : > { %v444_v9 = vsub.f32 1.5, %v443_v61  ;;  %v433_v12 = vmul.f32 0.5, %v432_v62 }
  0xc2   : > { %v978_v13 = vpop.eup %977  ;;  %v1356_v16 = vadd.f32 1e-05, %v349_v4  ;;  %v358_v4 = vsub.f32 %v1279_v2, %v1330_v32 }
  0xc3   : > { %v980_v17 = vpop.eup %979  ;;  %v445_v18 = vmul.f32 %v974_v48, %v444_v9  ;;  %v434_v19 = vsub.f32 1.5, %v433_v12  ;;  %v421_v20 = vmul.f32 %v978_v13, %v1338_v49  ;;  %v303_v21 = vpop.xlane.xlu0 %302  ;;  %vm427_vm8 = vweird.f32 %v978_v13 }
  0xc4   : > { %v275_v22 = vpop.xlane.xlu1 %274  ;;  %v411_v24 = vmul.f32 %v980_v17, %v1340_v51  ;;  %981 = vrsqrt.f32 %v1356_v16  ;;  %v301_v26 = vpop.xlane.xlu2 %300  ;;  %v324_v31 = vmul.f32 0.0078125, %v303_v21  ;;  %vm417_vm9 = vweird.f32 %v980_v17  ;;  %vm428_vm10 = vmor %vm426_vm6, %vm427_vm8 }
  0xc5   : > { %v449_v27 = vsel %vm448_vm4, %v974_v48, %v445_v18  ;;  %v435_v28 = vmul.f32 %v976_v54, %v434_v19  ;;  %v422_v30 = vmul.f32 %v978_v13, %v421_v20  ;;  %v323_v36 = vmul.f32 0.0078125, %v301_v26  ;;  %vm418_vm11 = vmor %vm416_vm7, %vm417_vm9 }
  0xc6   : > { %v457_v34 = vmul.f32 %v449_v27, %v361_v63  ;;  %v412_v35 = vmul.f32 %v980_v17, %v411_v24  ;;  %v1372_v37 = vmul.f32 0.0078125, %v275_v22  ;;  %v340_v41 = vsub.f32 %v324_v31, %v332_v23 }
  0xc7   : > { %v439_v39 = vsel %vm438_vm5, %v976_v54, %v435_v28  ;;  %v423_v40 = vmul.f32 0.5, %v422_v30  ;;  %v339_v44 = vsub.f32 %v323_v36, %v331_v25  ;;  %vm406_vm13 = vweird.f32 %v1356_v16 }
  0xc8   : > { %v456_v42 = vmul.f32 %v439_v39, %v360_v15  ;;  %v413_v43 = vmul.f32 0.5, %v412_v35  ;;  %v348_v47 = vmax.f32 %v340_v41, 0.0  ;;  %v468_v48 = vmul.f32 %v1368_v33, %v457_v34 }
  0xc9   : > { %v424_v38 = vsub.f32 1.5, %v423_v40  ;;  %v347_v53 = vmax.f32 %v339_v44, 0.0  ;;  %v330_v54 = vmul.f32 %v1372_v37, %v1372_v37  ;;  %v357_v27 = vsub.f32 %v1297_v8, %v1336_v46 }
  0xca   : > { %v982_v50 = vpop.eup %981  ;;  %v414_v52 = vsub.f32 1.5, %v413_v43  ;;  %v1385_v57 = vadd.f32 1e-05, %v348_v47  ;;  %v467_v59 = vmul.f32 %v1368_v33, %v456_v42  ;;  %v479_v63 = vadd.f32 %v1379_v45, %v468_v48 }
  0xcb   : > { %v425_v55 = vmul.f32 %v978_v13, %v424_v38  ;;  %v401_v56 = vmul.f32 %v982_v50, %v1356_v16  ;;  %v299_v58 = vpop.xlane.xlu0 %298  ;;  %v1390_v61 = vadd.f32 1e-05, %v347_v53  ;;  %vm407_vm12 = vweird.f32 %v982_v50 }
  0xcc   : > { %v415_v60 = vmul.f32 %v980_v17, %v414_v52  ;;  %v322_v62 = vmul.f32 0.0078125, %v299_v58  ;;  %983 = vrsqrt.f32 %v1385_v57  ;;  %v1404_v32 = vadd.f32 %v479_v63, %v1273_v0  ;;  %vm408_vm14 = vmor %vm406_vm13, %vm407_vm12 }
  0xcd   : > { %v429_v9 = vsel %vm428_vm10, %v978_v13, %v425_v55  ;;  %v402_v12 = vmul.f32 %v982_v50, %v401_v56  ;;  %985 = vrsqrt.f32 %v1390_v61  ;;  %v478_v13 = vadd.f32 %v1379_v45, %v467_v59 }
  0xce   : > { %v455_v49 = vmul.f32 %v429_v9, %v359_v7  ;;  %v419_v15 = vsel %vm418_vm11, %v980_v17, %v415_v60  ;;  %v338_v20 = vsub.f32 %v322_v62, %v330_v54  ;;  %629 = vmatpush.msra.mxu0 %v1404_v32  ;;  %878 = vmatpush.msra.mxu2 %v1404_v32  ;;  %vm396_vm1 = vweird.f32 %v1385_v57 }
  0xcf   : > { %v454_v18 = vmul.f32 %v419_v15, %v358_v4  ;;  %v403_v19 = vmul.f32 0.5, %v402_v12  ;;  %529 = vrot.lane.b32.xlu1 %v1404_v32, %s1126_s6  ;;  %v1414_v0 = vadd.f32 %v478_v13, %v1285_v3  ;;  %v356_v47 = vsub.f32 %v1303_v10, %v1348_v5  ;;  %v504_v13 = vld [vmem:[%s1628_s4] sm:$0xff] }
  0xd0   : > { %v466_v51 = vmul.f32 %v1368_v33, %v455_v49  ;;  %v346_v22 = vmax.f32 %v338_v20, 0.0  ;;  %vm386_vm3 = vweird.f32 %v1390_v61  ;;  %vm604_vm10 = vcmask 523264  }
  0xd1   : > { %v404_v21 = vsub.f32 1.5, %v403_v19  ;;  %v465_v29 = vmul.f32 %v1368_v33, %v454_v18  ;;  %630 = vmatpush.msra.mxu0 %v1414_v0  ;;  %879 = vmatpush.msra.mxu2 %v1414_v0 }
  0xd2   : > { %v477_v7 = vadd.f32 %v1379_v45, %v466_v51  ;;  %v984_v17 = vpop.eup %983  ;;  %v362_v23 = vadd.f32 1e-05, %v346_v22  ;;  %527 = vrot.lane.b32.xlu2 %v1414_v0, %s1126_s6 }
  0xd3   : > { %v405_v24 = vmul.f32 %v982_v50, %v404_v21  ;;  %v476_v25 = vadd.f32 %v1379_v45, %v465_v29  ;;  %v986_v26 = vpop.eup %985  ;;  %v391_v28 = vmul.f32 %v984_v17, %v1385_v57  ;;  %vm397_vm15 = vweird.f32 %v984_v17  ;;  %v507_v29 = vld [vmem:[%s1628_s4 + $0x18] sm:$0xff] }
  0xd4   : > { %v1426_v3 = vadd.f32 %v477_v7, %v1276_v1  ;;  %v381_v16 = vmul.f32 %v986_v26, %v1390_v61  ;;  %987 = vrsqrt.f32 %v362_v23  ;;  %vm387_vm0 = vweird.f32 %v986_v26  ;;  %vm398_vm2 = vmor %vm396_vm1, %vm397_vm15 }
  0xd5   : > { %v409_v30 = vsel %vm408_vm14, %v982_v50, %v405_v24  ;;  %v392_v46 = vmul.f32 %v984_v17, %v391_v28  ;;  %v1434_v34 = vadd.f32 %v476_v25, %v1279_v2  ;;  %v355_v50 = vsub.f32 %v1306_v11, %v1350_v6  ;;  %vm388_vm4 = vmor %vm386_vm3, %vm387_vm0  ;;  %v488_v24 = vld [vmem:[#allocation5] sm:$0xff] }
  0xd6   : > { %v453_v31 = vmul.f32 %v409_v30, %v357_v27  ;;  %631 = vmatpush.msra.mxu0 %v1426_v3  ;;  %880 = vmatpush.msra.mxu2 %v1426_v3  ;;  %v382_v35 = vmul.f32 %v986_v26, %v381_v16  ;;  %vm376_vm6 = vweird.f32 %v362_v23  ;;  %v354_v61 = vsub.f32 %v1315_v14, %v1372_v37  ;;  %v496_v28 = vld [vmem:[#allocation5 + $0x40] sm:$0xff]  ;;  %v489_v16 = vld [vmem:[#allocation5 + $0x8] sm:$0xff] }
  0xd7   : > { %525 = vrot.lane.b32.xlu0 %v1426_v3, %s1126_s6  ;;  %v393_v1 = vmul.f32 0.5, %v392_v46  ;;  %v499_v46 = vld [vmem:[#allocation5 + $0x58] sm:$0xff] }
  0xd8   : > { %632 = vmatpush.msra.mxu0 %v1434_v34  ;;  %881 = vmatpush.msra.mxu2 %v1434_v34  ;;  %v464_v36 = vmul.f32 %v1368_v33, %v453_v31  ;;  %v383_v39 = vmul.f32 0.5, %v382_v35  ;;  %v506_v35 = vld [vmem:[%s1628_s4 + $0x10] sm:$0xff] }
  0xd9   : > { %v394_v40 = vsub.f32 1.5, %v393_v1  ;;  %v498_v1 = vld [vmem:[#allocation5 + $0x50] sm:$0xff] }
  0xda   : > { %v475_v41 = vadd.f32 %v1379_v45, %v464_v36  ;;  %v988_v42 = vpop.eup %987  ;;  %v384_v43 = vsub.f32 1.5, %v383_v39  ;;  %523 = vrot.lane.b32.xlu2 %v1434_v34, %s1126_s6  ;;  %v492_v36 = vld [vmem:[#allocation5 + $0x20] sm:$0xff]  ;;  %v491_v39 = vld [vmem:[#allocation5 + $0x18] sm:$0xff] }
  0xdb   : > { %v395_v2 = vmul.f32 %v984_v17, %v394_v40  ;;  %v371_v44 = vmul.f32 %v988_v42, %v362_v23  ;;  %vm377_vm5 = vweird.f32 %v988_v42  ;;  %v501_v40 = vld [vmem:[#allocation5 + $0x68] sm:$0xff] }
  0xdc   : > { %v483_v38 = vadd.f32 %v475_v41, %v1297_v8  ;;  %v385_v48 = vmul.f32 %v986_v26, %v384_v43  ;;  %vm378_vm7 = vmor %vm376_vm6, %vm377_vm5  ;;  %v508_v41 = vld [vmem:[%s1628_s4 + $0x20] sm:$0xff]  ;;  %v493_v43 = vld [vmem:[#allocation5 + $0x28] sm:$0xff] }
  0xdd   : > { %v399_v52 = vsel %vm398_vm2, %v984_v17, %v395_v2  ;;  %v372_v53 = vmul.f32 %v988_v42, %v371_v44  ;;  %v494_v17 = vld [vmem:[#allocation5 + $0x30] sm:$0xff]  ;;  %v503_v2 = vld [vmem:[#allocation5 + $0x78] sm:$0xff] }
  0xde   : > { %633 = vmatpush.msra.mxu0 %v483_v38  ;;  %882 = vmatpush.msra.mxu2 %v483_v38  ;;  %v452_v54 = vmul.f32 %v399_v52, %v356_v47  ;;  %v389_v8 = vsel %vm388_vm4, %v986_v26, %v385_v48  ;;  %v509_v26 = vld [vmem:[%s1628_s4 + $0x28] sm:$0xff]  ;;  %v511_v44 = vld [vmem:[%s1628_s4 + $0x38] sm:$0xff] }
  0xdf   : > { %521 = vrot.lane.b32.xlu1 %v483_v38, %s1126_s6  ;;  %554 = vrot.lane.b32.xlu0 %v1404_v32, %s1127_s8  ;;  %v451_v5 = vmul.f32 %v389_v8, %v355_v50  ;;  %v373_v55 = vmul.f32 0.5, %v372_v53  ;;  %v1128_v32 = vmov 0   ;;  %v495_v47 = vld [vmem:[#allocation5 + $0x38] sm:$0xff]  ;;  %v497_v48 = vld [vmem:[#allocation5 + $0x48] sm:$0xff] }
  0xe0   : > { %v463_v56 = vmul.f32 %v1368_v33, %v452_v54  ;;  %968 = vset.pattern.permute.xlu1 %v1128_v32  ;;  %969 = vset.pattern.permute.xlu0 %v1128_v32 }
  0xe1   : > { %v374_v57 = vsub.f32 1.5, %v373_v55  ;;  %v462_v6 = vmul.f32 %v1368_v33, %v451_v5  ;;  %970 = vset.pattern.permute.xlu2 %v1128_v32 }
  0xe2   : > { %v474_v58 = vadd.f32 %v1379_v45, %v463_v56 }
  0xe3   : > { %v375_v59 = vmul.f32 %v988_v42, %v374_v57  ;;  %v473_v60 = vadd.f32 %v1379_v45, %v462_v6 }
  0xe4   : > { %v482_v62 = vadd.f32 %v474_v58, %v1303_v10 }
  0xe5   : > { %v379_v63 = vsel %vm378_vm7, %v988_v42, %v375_v59  ;;  %v481_v4 = vadd.f32 %v473_v60, %v1306_v11  ;;  %v512_v11 = vlaneseq  ;;  %v500_v42 = vld [vmem:[#allocation5 + $0x60] sm:$0xff] }
  0xe6   : > { %v450_v9 = vmul.f32 %v379_v63, %v354_v61  ;;  %634 = vmatpush.msra.mxu0 %v482_v62  ;;  %883 = vmatpush.msra.mxu2 %v482_v62 }
  0xe7   : > { %519 = vrot.lane.b32.xlu2 %v482_v62, %s1126_s6  ;;  %552 = vrot.lane.b32.xlu1 %v1414_v0, %s1127_s8  ;;  %v505_v0 = vld [vmem:[%s1628_s4 + $0x8] sm:$0xff] }
  0xe8   : > { %517 = vrot.lane.b32.xlu0 %v481_v4, %s1126_s6  ;;  %635 = vmatpush.msra.mxu0 %v481_v4  ;;  %v461_v12 = vmul.f32 %v1368_v33, %v450_v9  ;;  %v1478_v33 = vand.u32 127, %v512_v11 }
  0xe9   : > { %884 = vmatpush.msra.mxu2 %v481_v4 }
  0xea   : > { %v472_v37 = vadd.f32 %v1379_v45, %v461_v12  ;;  %vm876_vm8 = vcmp.ne.s32.totalorder %v1478_v33, 0  ;;  %vm877_vm9 = vcmp.ne.s32.totalorder %v1478_v33, 127 }
  0xec   : > { %v480_v10 = vadd.f32 %v472_v37, %v1315_v14 }
  0xee   : > { %636 = vmatpush.msra.mxu0 %v480_v10  ;;  %885 = vmatpush.msra.mxu2 %v480_v10 }
  0xef   : > { %550 = vrot.lane.b32.xlu2 %v1426_v3, %s1127_s8  ;;  %515 = vrot.lane.b32.xlu1 %v480_v10, %s1126_s6  ;;  %v490_v3 = vld [vmem:[#allocation5 + $0x10] sm:$0xff]  ;;  %s1069_s6 = scalar_lea.hbm %s1629_s5, 128 }
  0xf0   : > { %548 = vrot.lane.b32.xlu0 %v1434_v34, %s1127_s8  ;;  %v510_v34 = vld [vmem:[%s1628_s4 + $0x30] sm:$0xff]  ;;  %p1071_p9 = scmp.lt.s32.totalorder %s1069_s6, %s1065_s29 }
  0xf2   : > { %p1072_p2 = por %p1071_p9, %p1070_p11 }
  0xf4   : > { %p1073_p10 = pnand %p1072_p2, %p1068_p8 }
  0xf7   : > { %546 = vrot.lane.b32.xlu2 %v483_v38, %s1127_s8  ;;  %544 = vrot.lane.b32.xlu1 %v482_v62, %s1127_s8  ;;  %v502_v38 = vld [vmem:[#allocation5 + $0x70] sm:$0xff] }
  0xf8   : > { %542 = vrot.lane.b32.xlu0 %v481_v4, %s1127_s8 }
  0xff   : > { %540 = vrot.lane.b32.xlu2 %v480_v10, %s1127_s8  ;;  %566 = vperm.xlu1 %968, %v504_v13  }
 0x100   : > { %571 = vperm.xlu0 %969, %v505_v0  }
 0x107   : > { %581 = vperm.xlu1 %968, %v507_v29   ;;  %576 = vperm.xlu2 %970, %v506_v35  }
 0x108   : > { %596 = vperm.xlu0 %969, %v510_v34  }
 0x10f   : > { %591 = vperm.xlu1 %968, %v509_v26   ;;  %586 = vperm.xlu2 %970, %v508_v41  }
 0x117   : > { %601 = vperm.xlu2 %970, %v511_v44  }
 0x12c   : > { %v528_v14 = vpop.permute.xlu2 %527 }
 0x134   : > { %v524_v49 = vpop.permute.xlu2 %523 }
 0x141   : > { %v530_v45 = vpop.permute.xlu1 %529  ;;  %v520_v18 = vpop.permute.xlu2 %519 }
 0x142   : > { %830 = vmatpush.msk.msra.mxu0 %vm876_vm8, %v530_v45  ;;  %886 = vmatpush.msk.msra.mxu2 %vm876_vm8, %v530_v45 }
 0x144   : > { %832 = vmatpush.msk.msra.mxu0 %vm876_vm8, %v528_v14  ;;  %887 = vmatpush.msk.msra.mxu2 %vm876_vm8, %v528_v14 }
 0x149   : > { %v526_v15 = vpop.permute.xlu0 %525  ;;  %v551_v51 = vpop.permute.xlu2 %550 }
 0x14a   : > { %834 = vmatpush.msk.msra.mxu0 %vm876_vm8, %v526_v15  ;;  %888 = vmatpush.msk.msra.mxu2 %vm876_vm8, %v526_v15 }
 0x14c   : > { %836 = vmatpush.msk.msra.mxu0 %vm876_vm8, %v524_v49  ;;  %889 = vmatpush.msk.msra.mxu2 %vm876_vm8, %v524_v49 }
 0x151   : > { %v522_v19 = vpop.permute.xlu1 %521  ;;  %v555_v20 = vpop.permute.xlu0 %554 }
 0x152   : > { %838 = vmatpush.msk.msra.mxu0 %vm876_vm8, %v522_v19  ;;  %890 = vmatpush.msk.msra.mxu2 %vm876_vm8, %v522_v19  ;;  %v547_v25 = vpop.permute.xlu2 %546 }
 0x153   : > { %846 = vmatpush.msk.msra.mxu1 %vm877_vm9, %v555_v20  ;;  %894 = vmatpush.msk.msra.mxu3 %vm877_vm9, %v555_v20 }
 0x154   : > { %840 = vmatpush.msk.msra.mxu0 %vm876_vm8, %v520_v18  ;;  %891 = vmatpush.msk.msra.mxu2 %vm876_vm8, %v520_v18 }
 0x159   : > { %v553_v21 = vpop.permute.xlu1 %552 }
 0x15a   : > { %v518_v22 = vpop.permute.xlu0 %517  ;;  %848 = vmatpush.msk.msra.mxu1 %vm877_vm9, %v553_v21  ;;  %895 = vmatpush.msk.msra.mxu3 %vm877_vm9, %v553_v21  ;;  %v541_v31 = vpop.permute.xlu2 %540 }
 0x15b   : > { %842 = vmatpush.msk.msra.mxu0 %vm876_vm8, %v518_v22  ;;  %892 = vmatpush.msk.msra.mxu2 %vm876_vm8, %v518_v22 }
 0x15c   : > { %850 = vmatpush.msk.msra.mxu1 %vm877_vm9, %v551_v51  ;;  %896 = vmatpush.msk.msra.mxu3 %vm877_vm9, %v551_v51 }
 0x161   : > { %v516_v7 = vpop.permute.xlu1 %515 }
 0x162   : > { %v549_v23 = vpop.permute.xlu0 %548  ;;  %844 = vmatpush.msk.msra.mxu0 %vm876_vm8, %v516_v7  ;;  %893 = vmatpush.msk.msra.mxu2 %vm876_vm8, %v516_v7  ;;  %v577_v59 = vpop.permute.xlu2 %576 }
 0x163   : > { %852 = vmatpush.msk.msra.mxu1 %vm877_vm9, %v549_v23  ;;  %897 = vmatpush.msk.msra.mxu3 %vm877_vm9, %v549_v23 }
 0x164   : > { %654 = vmatmul.f32.vlgmr.msra.gmra.mxu2 %v494_v17  ;;  %645 = vmatmul.f32.vlgmr.msra.gmra.mxu0 %v488_v24 }
 0x165   : > { %854 = vmatpush.msk.msra.mxu1 %vm877_vm9, %v547_v25  ;;  %898 = vmatpush.msk.msra.mxu3 %vm877_vm9, %v547_v25 }
 0x169   : > { %v545_v27 = vpop.permute.xlu1 %544 }
 0x16a   : > { %856 = vmatpush.msk.msra.mxu1 %vm877_vm9, %v545_v27  ;;  %899 = vmatpush.msk.msra.mxu3 %vm877_vm9, %v545_v27  ;;  %v543_v30 = vpop.permute.xlu0 %542  ;;  %v587_v11 = vpop.permute.xlu2 %586 }
 0x16c   : > { %657 = vmatmul.f32.gmra.mxu2 %v496_v28  ;;  %858 = vmatpush.msk.msra.mxu1 %vm877_vm9, %v543_v30 }
 0x16d   : > { %900 = vmatpush.msk.msra.mxu3 %vm877_vm9, %v543_v30  ;;  %648 = vmatmul.f32.gmra.mxu0 %v490_v3 }
 0x16e   : > { %860 = vmatpush.msk.msra.mxu1 %vm877_vm9, %v541_v31 }
 0x16f   : > { %901 = vmatpush.msk.msra.mxu3 %vm877_vm9, %v541_v31  ;;  %861 = vmatmul.msk.f32.vlgmr.msra.gmra.mxu1 %vm604_vm10, %v489_v16 }
 0x170   : > { %866 = vmatmul.msk.f32.vlgmr.msra.gmra.mxu3 %vm604_vm10, %v499_v46 }
 0x171   : > { %v567_v52 = vpop.permute.xlu1 %566 }
 0x172   : > { %v572_v57 = vpop.permute.xlu0 %571  ;;  %v602_v51 = vpop.permute.xlu2 %601 }
 0x174   : > { %660 = vmatmul.f32.gmra.mxu2 %v498_v1 }
 0x175   : > { %651 = vmatmul.f32.gmra.mxu0 %v492_v36 }
 0x177   : > { %862 = vmatmul.msk.f32.gmra.mxu1 %vm604_vm10, %v491_v39 }
 0x178   : > { %867 = vmatmul.msk.f32.gmra.mxu3 %vm604_vm10, %v501_v40 }
 0x179   : > { %v582_v55 = vpop.permute.xlu1 %581 }
 0x17a   : > { %v597_v49 = vpop.permute.xlu0 %596 }
 0x17c   : > { %663 = vmatmul.f32.gmra.mxu2 %v500_v42 }
 0x17f   : > { %863 = vmatmul.msk.f32.gmra.mxu1 %vm604_vm10, %v493_v43 }
 0x180   : > { %868 = vmatmul.msk.f32.gmra.mxu3 %vm604_vm10, %v503_v2 }
 0x181   : > { %v592_v63 = vpop.permute.xlu1 %591 }
 0x184   : > { %666 = vmatmul.f32.gmra.mxu2 %v502_v38 }
 0x187   : > { %864 = vmatmul.msk.f32.gmra.mxu1 %vm604_vm10, %v495_v47 }
 0x18f   : > { %865 = vmatmul.msk.f32.gmra.mxu1 %vm604_vm10, %v497_v48 }
 0x1e1   : > { %v646_v50 = vpop.f32.mrf.mxu0 }
 0x1e2   : > { %v647_v54 = vadd.f32 %v646_v50, %v567_v52 }
 0x1e7   : > { %v655_v53 = vpop.f32.mrf.mxu2 }
 0x1e8   : > { %v656_v20 = vadd.f32 %v655_v53, %v582_v55 }
 0x1ea   : > { %v649_v5 = vpop.f32.mrf.mxu0 }
 0x1eb   : > { %v650_v58 = vadd.f32 %v649_v5, %v572_v57 }
 0x1ec   : > { %v687_v8 = vpop.f32.mrf.mxu1 }
 0x1ed   : > { %v688_v56 = vadd.f32 %v687_v8, %v647_v54 }
 0x1ef   : > { %711 = vst [vmem:[%s1580_s17] sm:$0xff] %v688_v56  ;;  %v658_v6 = vpop.f32.mrf.mxu2 }
 0x1f0   : > { %v659_v7 = vadd.f32 %v658_v6, %v587_v11 }
 0x1f2   : > { %v652_v4 = vpop.f32.mrf.mxu0 }
 0x1f3   : > { %v702_v60 = vpop.f32.mrf.mxu3  ;;  %v653_v37 = vadd.f32 %v652_v4, %v577_v59 }
 0x1f4   : > { %v690_v61 = vpop.f32.mrf.mxu1 }
 0x1f5   : > { %v691_v62 = vadd.f32 %v690_v61, %v650_v58 }
 0x1f7   : > { %712 = vst [vmem:[%s1580_s17 + $0x8] sm:$0xff] %v691_v62  ;;  %v661_v9 = vpop.f32.mrf.mxu2 }
 0x1f8   : > { %v662_v12 = vadd.f32 %v661_v9, %v592_v63 }
 0x1fa   : > { %v703_v10 = vadd.f32 %v702_v60, %v662_v12 }
 0x1fb   : > { %v705_v45 = vpop.f32.mrf.mxu3 }
 0x1fc   : > { %716 = vst [vmem:[%s1580_s17 + $0x28] sm:$0xff] %v703_v10  ;;  %v693_v14 = vpop.f32.mrf.mxu1 }
 0x1fd   : > { %v694_v33 = vadd.f32 %v693_v14, %v653_v37 }
 0x1ff   : > { %713 = vst [vmem:[%s1580_s17 + $0x10] sm:$0xff] %v694_v33  ;;  %v664_v15 = vpop.f32.mrf.mxu2 }
 0x200   : > { %v665_v18 = vadd.f32 %v664_v15, %v597_v49 }
 0x202   : > { %v706_v19 = vadd.f32 %v705_v45, %v665_v18 }
 0x203   : > { %v708_v22 = vpop.f32.mrf.mxu3 }
 0x204   : > { %717 = vst [vmem:[%s1580_s17 + $0x30] sm:$0xff] %v706_v19  ;;  %v696_v32 = vpop.f32.mrf.mxu1 }
 0x205   : > { %v697_v13 = vadd.f32 %v696_v32, %v656_v20 }
 0x207   : > { %714 = vst [vmem:[%s1580_s17 + $0x18] sm:$0xff] %v697_v13  ;;  %v667_v21 = vpop.f32.mrf.mxu2 }
 0x208   : > { %v668_v29 = vadd.f32 %v667_v21, %v602_v51 }
 0x20a   : > { %v709_v0 = vadd.f32 %v708_v22, %v668_v29 }
 0x20c   : > { %718 = vst [vmem:[%s1580_s17 + $0x38] sm:$0xff] %v709_v0  ;;  %v699_v17 = vpop.f32.mrf.mxu1 }
 0x20d   : > { %v700_v24 = vadd.f32 %v699_v17, %v659_v7 }
 0x20f   : > { %715 = vst [vmem:[%s1580_s17 + $0x20] sm:$0xff] %v700_v24 }
 0x210   : > { %1076 = shalt.err (!%p1073_p10)
}
 0x211   : > { %s1129_s28 = smov 128   ;;  %s1130_s16 = smov 8  }
 0x212   : > { %908 = dma.vmem_to_hbm [thread:$0]  (%p1228_p7), %s733_s10, 1024, %s735_s11, %s720_s22, %s1129_s28, %s1129_s28, %s1130_s16  }
 0x213 PF: > { %s749_s17 = sand.u32 1, %s1107_s18   ;;  %p1635_p12 = scmp.ge.s32.totalorder %s1119_s21, 2 }
 0x214   : > { %s750_s9 = scalar_lea.sflag [#allocation4], %s749_s17 }
 0x215   : > { %p919_p13 = pnand %p1635_p12, %p1196_p6 }
 0x217   : > { %p920_p0 = pneg %p919_p13 }
 0x219   : > { %1102 = dma.done.wait (%p920_p0), %s750_s9, 1024  }
 0x21a   : > { %1104 = vsyncadd (%p920_p0), %s750_s9, 4294966272  ;;  %p19_p3 = scmp.ge.s32.totalorder %s1214_s7, 4   ;;  %s1636_s18 = smov %s1111_s19 }
 0x21b   : > { %s1637_s19 = smov %s1115_s20  ;;  %s1638_s20 = smov %s1224_s12 }
 0x21c   : > { %s1639_s21 = smov %s1214_s7  ;;  %21 = sbr.rel (!%p19_p3) target bundleno = 6 (0x6), region = 89 }
 0x221   :  { %756 = vsyncpa [#allocation3], 1 }
 0x222   :  { %758 = vsyncpa [#allocation3 + $0x1], 1 }
 0x223   :  { %759 = vsyncpa [#allocation6], 1 }
 0x224   :  { %760 = vsyncpa [#allocation4], 1 }
 0x225   :  { %762 = vsyncpa [#allocation4 + $0x1], 1 }

</bundles_post_ra>
